<compile_context>
chip_gen: v5e
topology: v5e:2x2
jax: 0.10.0
libtpu: 0.0.40
codegen_flags: <defaults>
</compile_context>

<pallas_src>
import functools
import math

import jax
import jax.numpy as jnp
from jax import lax
from jax.experimental import pallas as pl
from jax.experimental.pallas import tpu as pltpu

_LANES = 128
_SUBLANES = 8


def _roll_fwd(x, k, axis):
    """y[..., i, ...] = x[..., (i + k) % n, ...] along `axis` (static k >= 0)."""
    n = x.shape[axis]
    k = k % n
    if k == 0:
        return x
    return pltpu.roll(x, shift=n - k, axis=axis)


def _tv_kernel(x_ref, hscale_ref, wscale_ref, out_ref, acc_ref, *,
               h_q, h_rem, stitch_dw):
    i = pl.program_id(1)

    @pl.when(i == 0)
    def _init():
        acc_ref[...] = jnp.zeros_like(acc_ref)

    x = x_ref[...].astype(jnp.float32)            # (rows_per_block, 128), lane-dense
    rows = x.shape[0]
    lane = lax.broadcasted_iota(jnp.int32, (rows, _LANES), 1)

    x_next_row = _roll_fwd(x, 1, 0)               # next reshaped row (sublane roll)

    # W-direction neighbour: flattened offset +1.
    dw_nb = _roll_fwd(x, 1, 1)
    if stitch_dw:                                 # only needed when 128 % W != 0
        dw_nb = jnp.where(lane < _LANES - 1, dw_nb, _roll_fwd(x_next_row, 1, 1))
    dw = dw_nb - x

    # H-direction neighbour: flattened offset +W = h_q*128 + h_rem.
    base = x if h_q == 0 else _roll_fwd(x, h_q, 0)
    base1 = x_next_row if h_q == 0 else _roll_fwd(x, h_q + 1, 0)
    if h_rem == 0:
        dh_nb = base
    else:
        dh_nb = jnp.where(lane < _LANES - h_rem,
                          _roll_fwd(base, h_rem, 1),
                          _roll_fwd(base1, h_rem, 1))
    dh = dh_nb - x

    # Masks are pre-scaled by 2*weight/(batch*count_{h,w}) and are zero on all
    # invalid / wrap-around / padded positions, so this is pure VPU work.
    acc_ref[...] += dh * dh * hscale_ref[...] + dw * dw * wscale_ref[...]

    @pl.when(i == pl.num_programs(1) - 1)
    def _finish():
        out_ref[...] = (jnp.zeros((1, _SUBLANES, _LANES), jnp.float32)
                        + jnp.sum(acc_ref[...]))


def tv_loss(x, tv_loss_weight: float = 1.0):
    """Pallas TPU implementation of TVLoss.forward (returns a scalar)."""
    B, C, H, W = x.shape
    n_slices = B * C
    slice_elems = H * W

    count_h = C * (H - 1) * W
    count_w = C * H * (W - 1)
    # TODO(synk): PyTorch returns nan when H == 1 or W == 1 (0/0); here that
    # degenerate direction simply contributes 0 to the loss.
    scale_h = (2.0 * float(tv_loss_weight) / float(B)) / count_h if count_h else 0.0
    scale_w = (2.0 * float(tv_loss_weight) / float(B)) / count_w if count_w else 0.0

    # --- choose a lane-dense block: whole (H, W) slices, multiple of 8*128 elems ---
    itemsize = jnp.dtype(x.dtype).itemsize
    sub_mult = _SUBLANES * max(1, 4 // itemsize)      # 8 rows for f32, 16 for bf16
    min_block_elems = _LANES * sub_mult
    tb0 = min_block_elems // math.gcd(slice_elems, min_block_elems)
    target_elems = (1 << 20) // 4                     # ~1 MiB of f32 per block
    tb = tb0 * max(1, target_elems // (tb0 * slice_elems))
    slices_per_core = -(-n_slices // 2)
    tb = max(tb0, min(tb, -(-slices_per_core // tb0) * tb0))
    nb = -(-slices_per_core // tb)                    # grid steps per core
    n_slices_pad = 2 * nb * tb

    rows_per_block = (tb * slice_elems) // _LANES
    rows_total = (n_slices_pad * slice_elems) // _LANES

    total = n_slices * slice_elems
    total_pad = n_slices_pad * slice_elems
    x_flat = x.reshape(total)
    if total_pad > total:
        x_flat = jnp.pad(x_flat, (0, total_pad - total))
    x2d = x_flat.reshape(rows_total, _LANES)

    # Pre-scaled validity masks.  Every block holds whole slices, so a single
    # block-sized mask is valid for every grid step (constant index_map -> one DMA).
    pos = jnp.arange(rows_per_block * _LANES, dtype=jnp.int32)
    pos_in_slice = pos % slice_elems
    hscale = jnp.where(pos_in_slice < (H - 1) * W,
                       jnp.float32(scale_h), jnp.float32(0.0))
    wscale = jnp.where(pos_in_slice % W < (W - 1),
                       jnp.float32(scale_w), jnp.float32(0.0))
    hscale = hscale.reshape(rows_per_block, _LANES)
    wscale = wscale.reshape(rows_per_block, _LANES)

    h_q, h_rem = divmod(W, _LANES)
    kernel = functools.partial(
        _tv_kernel, h_q=h_q, h_rem=h_rem, stitch_dw=(_LANES % W != 0))

    block_bytes = rows_per_block * _LANES * 4
    cost = pl.CostEstimate(
        flops=10 * total_pad,
        transcendentals=0,
        bytes_accessed=int(total_pad * itemsize + 2 * block_bytes
                           + 2 * _SUBLANES * _LANES * 4),
    )

    partials = pl.pallas_call(
        kernel,
        out_shape=jax.ShapeDtypeStruct((2, _SUBLANES, _LANES), jnp.float32),
        grid_spec=pltpu.PrefetchScalarGridSpec(
            num_scalar_prefetch=0,
            grid=(2, nb),
            in_specs=[
                pl.BlockSpec((rows_per_block, _LANES), lambda c, i: (c * nb + i, 0)),
                pl.BlockSpec((rows_per_block, _LANES), lambda c, i: (0, 0)),
                pl.BlockSpec((rows_per_block, _LANES), lambda c, i: (0, 0)),
            ],
            out_specs=pl.BlockSpec((1, _SUBLANES, _LANES), lambda c, i: (c, 0, 0)),
            scratch_shapes=[pltpu.VMEM((rows_per_block, _LANES), jnp.float32)],
        ),
        compiler_params=pltpu.CompilerParams(
            dimension_semantics=("parallel", "arbitrary"),
            vmem_limit_bytes=32 * 1024 * 1024,
        ),
        cost_estimate=cost,
    )(x2d, hscale, wscale)

    return partials[0, 0, 0] + partials[1, 0, 0]


def tv_loss_ref(x, tv_loss_weight: float = 1.0):
    """Pure-JAX reference matching the PyTorch module exactly."""
    B, C, H, W = x.shape
    count_h = C * (H - 1) * W
    count_w = C * H * (W - 1)
    h_tv = jnp.sum((x[:, :, 1:, :] - x[:, :, : H - 1, :]) ** 2)
    w_tv = jnp.sum((x[:, :, :, 1:] - x[:, :, :, : W - 1]) ** 2)
    return tv_loss_weight * 2.0 * (h_tv / count_h + w_tv / count_w) / B


if __name__ == "__main__":
    key = jax.random.PRNGKey(0)

    # Primary shape from the module's NCHW forward.
    B, C, H, W = 2, 4, 16, 16
    x = jax.random.normal(key, (B, C, H, W), dtype=jnp.float32)
    out = jax.block_until_ready(tv_loss(x, tv_loss_weight=1.0))
    ref = tv_loss_ref(x, tv_loss_weight=1.0)
    assert jnp.allclose(out, ref, rtol=1e-5, atol=1e-5), (out, ref)

    # Second small shape: exercises the zero-padding path (B*C not a multiple of
    # the per-block slice count) and a non-unit weight.
    x2 = jax.random.normal(jax.random.PRNGKey(1), (2, 3, 16, 16), dtype=jnp.float32)
    out2 = jax.block_until_ready(tv_loss(x2, tv_loss_weight=0.5))
    ref2 = tv_loss_ref(x2, tv_loss_weight=0.5)
    assert jnp.allclose(out2, ref2, rtol=1e-5, atol=1e-5), (out2, ref2)

    print("KERNEL_OK")
</pallas_src>

<mosaic_0001>
module attributes {stable_mosaic.version = 11 : i64} {
  func.func @_tv_kernel(%arg0: i32, %arg1: i32, %arg2: memref<8x128xf32, #tpu.memory_space<vmem>>, %arg3: memref<8x128xf32, #tpu.memory_space<vmem>>, %arg4: memref<8x128xf32, #tpu.memory_space<vmem>>, %arg5: memref<1x8x128xf32, #tpu.memory_space<vmem>>, %arg6: memref<8x128xf32, #tpu.memory_space<vmem>>) attributes {dimension_semantics = [#tpu.dimension_semantics<parallel>, #tpu.dimension_semantics<arbitrary>], iteration_bounds = array<i64: 2, 1>, scalar_prefetch = 0 : i64, scratch_operands = 1 : i64, tpu.core_type = #tpu.core_type<tc>, window_params = [{transform_indices = @transform_0, window_bounds = array<i64: 8, 128>}, {pipeline_mode = #tpu.pipeline_mode<synchronous>, transform_indices = @transform_1, window_bounds = array<i64: 8, 128>}, {pipeline_mode = #tpu.pipeline_mode<synchronous>, transform_indices = @transform_2, window_bounds = array<i64: 8, 128>}, {transform_indices = @transform_3, window_bounds = array<i64: 1, 8, 128>}]} {
    %c0_i32 = arith.constant 0 : i32
    %0 = arith.cmpi eq, %arg1, %c0_i32 : i32
    %1 = arith.extui %0 : i1 to i32
    %c0_i32_0 = arith.constant 0 : i32
    %2 = arith.cmpi ne, %1, %c0_i32_0 : i32
    scf.if %2 {
      %cst = arith.constant 0.000000e+00 : f32
      %27 = vector.broadcast %cst : f32 to vector<8x128xf32>
      %c0_14 = arith.constant 0 : index
      %c0_15 = arith.constant 0 : index
      %28 = vector.load %arg6[%c0_14, %c0_15] : memref<8x128xf32, #tpu.memory_space<vmem>>, vector<8x128xf32>
      tpu.vector_store %arg6[%c0_14, %c0_15], %27 {strides = array<i32>} : memref<8x128xf32, #tpu.memory_space<vmem>>, vector<8x128xf32>,
    } else {
    }
    %c0 = arith.constant 0 : index
    %c0_1 = arith.constant 0 : index
    %3 = vector.load %arg2[%c0, %c0_1] : memref<8x128xf32, #tpu.memory_space<vmem>>, vector<8x128xf32>
    %4 = tpu.iota {dimensions = array<i32: 1>} : vector<8x128xi32>
    %c7_i32 = arith.constant 7 : i32
    %5 = tpu.dynamic_rotate %3 by %c7_i32 dim 0 : vector<8x128xf32>, i32 -> vector<8x128xf32>
    %c127_i32 = arith.constant 127 : i32
    %6 = tpu.dynamic_rotate %3 by %c127_i32 dim 1 : vector<8x128xf32>, i32 -> vector<8x128xf32>
    %7 = arith.subf %6, %3 : vector<8x128xf32>
    %c112_i32 = arith.constant 112 : i32
    %8 = vector.broadcast %c112_i32 : i32 to vector<8x128xi32>
    %9 = arith.cmpi slt, %4, %8 : vector<8x128xi32>
    %c112_i32_2 = arith.constant 112 : i32
    %10 = tpu.dynamic_rotate %3 by %c112_i32_2 dim 1 : vector<8x128xf32>, i32 -> vector<8x128xf32>
    %c112_i32_3 = arith.constant 112 : i32
    %11 = tpu.dynamic_rotate %5 by %c112_i32_3 dim 1 : vector<8x128xf32>, i32 -> vector<8x128xf32>
    %12 = arith.select %9, %10, %11 : vector<8x128xi1>, vector<8x128xf32>
    %13 = arith.subf %12, %3 : vector<8x128xf32>
    %c0_4 = arith.constant 0 : index
    %c0_5 = arith.constant 0 : index
    %14 = vector.load %arg6[%c0_4, %c0_5] : memref<8x128xf32, #tpu.memory_space<vmem>>, vector<8x128xf32>
    %15 = arith.mulf %13, %13 : vector<8x128xf32>
    %c0_6 = arith.constant 0 : index
    %c0_7 = arith.constant 0 : index
    %16 = vector.load %arg3[%c0_6, %c0_7] : memref<8x128xf32, #tpu.memory_space<vmem>>, vector<8x128xf32>
    %17 = arith.mulf %15, %16 : vector<8x128xf32>
    %18 = arith.mulf %7, %7 : vector<8x128xf32>
    %c0_8 = arith.constant 0 : index
    %c0_9 = arith.constant 0 : index
    %19 = vector.load %arg4[%c0_8, %c0_9] : memref<8x128xf32, #tpu.memory_space<vmem>>, vector<8x128xf32>
    %20 = arith.mulf %18, %19 : vector<8x128xf32>
    %21 = arith.addf %17, %20 : vector<8x128xf32>
    %22 = arith.addf %14, %21 : vector<8x128xf32>
    %c0_10 = arith.constant 0 : index
    %c0_11 = arith.constant 0 : index
    %23 = vector.load %arg6[%c0_10, %c0_11] : memref<8x128xf32, #tpu.memory_space<vmem>>, vector<8x128xf32>
    tpu.vector_store %arg6[%c0_10, %c0_11], %22 {strides = array<i32>} : memref<8x128xf32, #tpu.memory_space<vmem>>, vector<8x128xf32>,
    %c0_i32_12 = arith.constant 0 : i32
    %24 = arith.cmpi eq, %arg1, %c0_i32_12 : i32
    %25 = arith.extui %24 : i1 to i32
    %c0_i32_13 = arith.constant 0 : i32
    %26 = arith.cmpi ne, %25, %c0_i32_13 : i32
    scf.if %26 {
      %cst = arith.constant 0.000000e+00 : f32
      %27 = vector.broadcast %cst : f32 to vector<1x8x128xf32>
      %c0_14 = arith.constant 0 : index
      %c0_15 = arith.constant 0 : index
      %28 = vector.load %arg6[%c0_14, %c0_15] : memref<8x128xf32, #tpu.memory_space<vmem>>, vector<8x128xf32>
      %29 = vector.shape_cast %28 : vector<8x128xf32> to vector<1x8x128xf32>
      %cst_16 = arith.constant dense<0.000000e+00> : vector<1xf32>
      %30 = vector.multi_reduction <add>, %29, %cst_16 [1, 2] : vector<1x8x128xf32> to vector<1xf32>
      %31 = vector.shape_cast %30 : vector<1xf32> to vector<1x1x1xf32>
      %32 = vector.extract %31[0, 0, 0] : f32 from vector<1x1x1xf32>
      %33 = vector.broadcast %32 : f32 to vector<1x8x128xf32>
      %34 = arith.addf %27, %33 : vector<1x8x128xf32>
      %c0_17 = arith.constant 0 : index
      %c0_18 = arith.constant 0 : index
      %c0_19 = arith.constant 0 : index
      %35 = vector.load %arg5[%c0_17, %c0_18, %c0_19] : memref<1x8x128xf32, #tpu.memory_space<vmem>>, vector<1x8x128xf32>
      tpu.vector_store %arg5[%c0_17, %c0_18, %c0_19], %34 {strides = array<i32>} : memref<1x8x128xf32, #tpu.memory_space<vmem>>, vector<1x8x128xf32>,
    } else {
    }
    return
  }
  func.func @transform_0(%arg0: i32, %arg1: i32) -> (i32, i32) {
    %c1_i32 = arith.constant 1 : i32
    %0 = arith.muli %arg0, %c1_i32 : i32
    %1 = arith.addi %0, %arg1 : i32
    %c0_i32 = arith.constant 0 : i32
    %c0_i32_0 = arith.constant 0 : i32
    return %1, %c0_i32 : i32, i32
  }
  func.func @transform_1(%arg0: i32, %arg1: i32) -> (i32, i32) {
    %c0_i32 = arith.constant 0 : i32
    %c0_i32_0 = arith.constant 0 : i32
    %c0_i32_1 = arith.constant 0 : i32
    return %c0_i32, %c0_i32_0 : i32, i32
  }
  func.func @transform_2(%arg0: i32, %arg1: i32) -> (i32, i32) {
    %c0_i32 = arith.constant 0 : i32
    %c0_i32_0 = arith.constant 0 : i32
    %c0_i32_1 = arith.constant 0 : i32
    return %c0_i32, %c0_i32_0 : i32, i32
  }
  func.func @transform_3(%arg0: i32, %arg1: i32) -> (i32, i32, i32) {
    %c0_i32 = arith.constant 0 : i32
    %c0_i32_0 = arith.constant 0 : i32
    %c0_i32_1 = arith.constant 0 : i32
    return %arg0, %c0_i32, %c0_i32_0 : i32, i32, i32
  }
}

</mosaic_0001>

<bundles_post_ra>
// kernel: tpu_custom_call.1
= control target key start
LH: loop header
LB: loop body
LE: loop exit
PB: predicated region body
PF: predicated region fallthrough
CT: control target
= control target key end

     0   :  { %8 = vsyncpa [#allocation4], 0  ;;  %s844_s0 = inlined_call_operand.hbm [shape: f32[16,128], index: 0, kind: input, shape index: {}]   ;;  %s845_s1 = inlined_call_operand.hbm [shape: f32[8,128], index: 1, kind: input, shape index: {}]   ;;  %s846_s2 = inlined_call_operand.hbm [shape: f32[8,128], index: 2, kind: input, shape index: {}]   ;;  %s847_s3 = inlined_call_operand.hbm [shape: f32[2,8,128], index: 3, kind: output, shape index: {}]  }
   0x1   :  { %10 = vsyncpa [#allocation4 + $0x1], 0 }
   0x2   :  { %11 = vsyncpa [#allocation7], 0 }
   0x3   :  { %12 = vsyncpa [#allocation5], 0 }
   0x4   :  { %14 = vsyncpa [#allocation5 + $0x1], 0  ;;  %s698_s12 = smov 0   ;;  %s700_s13 = smov 0  }
   0x5   :  { %s702_s14 = smov 0   ;;  %s704_s15 = smov 0  }
   0x6   :  { %s706_s16 = smov 0   ;;  %s708_s17 = smov 0  }
   0x7 LB: > { %s392_s18 = sadd.s32 4294967295, %s672_s17   ;;  %s393_s19 = sadd.s32 4294967294, %s672_s17   ;;  %s672_s17 = sphi %s708_s17, %s20_s17   ;;  %s668_s16 = sphi %s706_s16, %s857_s16   ;;  %s664_s15 = sphi %s704_s15, %s856_s15   ;;  %s660_s14 = sphi %s702_s14, %s855_s14   ;;  %s656_s13 = sphi %s700_s13, %s854_s13   ;;  %s652_s12 = sphi %s698_s12, %s853_s12  }
   0x8   : > { %p54_p0 = scmp.ne.s32.totalorder %s656_s13, %s652_s12  ;;  %p732_p1 = scmp.eq.s32.totalorder %s392_s18, 0 }
   0x9   : > { %p126_p2 = scmp.eq.s32.totalorder %s393_s19, 1  ;;  %p394_p4 = scmp.ge.s32.totalorder %s672_s17, 1 }
   0xa   : > { %p738_p3 = por %p732_p1, %p54_p0  ;;  %p133_p6 = scmp.lt.s32.totalorder %s672_s17, 3 }
   0xb   : > { %p743_p5 = por %p126_p2, %p54_p0  ;;  %s145_s25 = sshll.u32 %s845_s1, 4  ;;  %s146_s25 = int_to_ptr.hbm [resolvable:$true] %s145_s25 }
   0xc   : > { %p751_p7 = pnand %p394_p4, %p133_p6  ;;  %p397_p8 = scmp.ge.s32.totalorder %s672_s17, 2 }
   0xd   : > { %s674_s27 = smov [#allocation6]   ;;  %s157_s4 = sshll.u32 %s846_s2, 4  ;;  %s158_s4 = int_to_ptr.hbm [resolvable:$true] %s157_s4 }
   0xe   : > { %p423_p9 = pneg %p751_p7  ;;  %s147_s28 = sshll.u32 %s674_s27, 4  ;;  %s148_s28 = int_to_ptr.vmem [resolvable:$true] %s147_s28 }
   0xf   : > { %s675_s5 = smov [#allocation8]   ;;  %p120_p11 = scmp.eq.s32.totalorder %s392_s18, 1 }
  0x10   : > { %p424_p10 = pnand %p423_p9, %p732_p1  ;;  %s159_s6 = sshll.u32 %s675_s5, 4  ;;  %s160_s6 = int_to_ptr.vmem [resolvable:$true] %s159_s6 }
  0x11   : > { %s32_s7 = sadd.s32 1, %s668_s16  ;;  %s41_s8 = sadd.s32 1, %s660_s14 }
  0x12   : > { %426 = dma.hbm_to_vmem [thread:$0]  (!%p424_p10), %s146_s25, 128, %s148_s28, [#allocation7]  }
  0x13   : > { %429 = dma.hbm_to_vmem [thread:$0]  (!%p424_p10), %s158_s4, 128, %s160_s6, [#allocation7]  }
  0x14   : > { %p34_p12 = scmp.ge.s32.totalorder %s32_s7, 2  ;;  %p48_p13 = scmp.ne.s32.totalorder %s660_s14, %s656_s13 }
  0x15   : > { %p49_p0 = scmp.eq.s32.totalorder %s672_s17, 0  ;;  %p440_p4 = scmp.lt.s32.totalorder %s672_s17, 2 }
  0x16   : > { %s859_s7 = smov (%p34_p12, %s32_s7), 0  ;;  %p770_p2 = por %p120_p11, %p48_p13 }
  0x17   : > { %s38_s10 = ssub.s32 %s668_s16, %s859_s7  ;;  %s170_s11 = sand.u32 1, %s660_s14  }
  0x18   : > { %p39_p6 = scmp.eq.s32.totalorder %s38_s10, 0  ;;  %p50_p9 = por %p49_p0, %p48_p13 }
  0x19   : > { %s398_s19 = sshll.u32 %s170_s11, 3  ;;  %s399_s18 = sshll.u32 %s668_s16, 3 }
  0x1a   : > { %s780_s23 = scalar_select %p39_p6, %s660_s14, %s41_s8  }
  0x1b   : > { %s179_s27 = scalar_lea.hbm %s844_s0, %s399_s18  ;;  %s174_s29 = scalar_lea.vmem [#allocation3], %s398_s19 }
  0x1c   : > { %s181_s28 = sshll.u32 %s179_s27, 4  ;;  %s183_s30 = sshll.u32 %s174_s29, 4  ;;  %s182_s28 = int_to_ptr.hbm [resolvable:$true] %s181_s28  ;;  %s184_s30 = int_to_ptr.vmem [resolvable:$true] %s183_s30 }
  0x1d   : > { %p431_p10 = pnand %p440_p4, %p50_p9  ;;  %s171_s4 = scalar_lea.sflag [#allocation4], %s170_s11 }
  0x1e   : > { %192 = sbr.rel (%p751_p7) target bundleno = 353 (0x161), region = 32  ;;  %s790_s5 = sand.u32 (!%p751_p7), 1, %s656_s13  }
  0x1f   : > { %433 = dma.hbm_to_vmem [thread:$0]  (!%p431_p10), %s182_s28, 128, %s184_s30, %s171_s4  }
  0x20   : > { %s401_s6 = sshll.u32 (!%p751_p7), %s790_s5, 3  ;;  %s195_s8 = scalar_lea.sflag (!%p751_p7), [#allocation4], %s790_s5 }
  0x21   : > { %s198_s10 = scalar_lea.vmem (!%p751_p7), [#allocation3], %s401_s6 }
  0x23   : > { %639 = dma.done.wait (%p738_p3), %s195_s8, 128  }
  0x24   : > { %641 = vsyncadd (%p738_p3), %s195_s8, 4294967168 }
  0x25   : > { %643 = dma.done.wait (%p732_p1), [#allocation7], 256  }
  0x26   : > { %645 = vsyncadd (%p732_p1), [#allocation7], 4294967040  ;;  %v238_v0 = vld [vmem:[%s198_s10] sm:$0xff]  ;;  %s676_s26 = smov 112   ;;  %s677_s11 = smov 127   ;;  %v239_v2 = vlaneseq  ;;  %v257_v10 = vld [vmem:[#allocation8] sm:$0xff] }
  0x27   : > { %246 = vrot.lane.b32.xlu0 %v238_v0, %s676_s26  ;;  %242 = vrot.lane.b32.xlu1 %v238_v0, %s677_s11  ;;  %v241_v1 = vrot.slane %v238_v0, 1  ;;  %v254_v12 = vld [vmem:[#allocation6] sm:$0xff]  ;;  %s406_s20 = sshll.u32 %s664_s15, 3  ;;  %s231_s24 = scalar_lea.vmem [#allocation9], %s401_s6 }
  0x28   : > { %v240_v5 = vand.u32 127, %v239_v2  ;;  %s289_s18 = scalar_lea.hbm %s847_s3, %s406_s20  ;;  %s291_s25 = sshll.u32 %s231_s24, 4  ;;  %s292_s25 = int_to_ptr.vmem [resolvable:$true] %s291_s25 }
  0x29   : > { %s293_s27 = sshll.u32 %s289_s18, 4  ;;  %s279_s29 = scalar_lea.sflag [#allocation5], %s790_s5  ;;  %s294_s27 = int_to_ptr.hbm [resolvable:$true] %s293_s27 }
  0x2a   : > { %vm245_vm0 = vcmp.lt.s32.totalorder %v240_v5, 112  ;;  %s600_s30 = sshra.s32 %s294_s27, 4  ;;  %s606_s10 = scalar_lea.hbm %s847_s3, 16  ;;  %s601_s30 = int_to_ptr.hbm [resolvable:$true] %s600_s30 }
  0x2b   : > { %s602_s4 = scalar_lea.hbm %s601_s30, 8  ;;  %p607_p11 = scmp.lt.s32.totalorder %s601_s30, %s847_s3 }
  0x2c   : > { %p603_p1 = scmp.ne.s32.totalorder %s601_s30, %s602_s4  ;;  %p608_p12 = scmp.lt.s32.totalorder %s606_s10, %s602_s4 }
  0x2e   : > { %p604_p3 = pnand %p603_p1, %p770_p2  ;;  %p609_p13 = por %p608_p12, %p607_p11 }
  0x2f   : > { %248 = vrot.lane.b32.xlu0 %v241_v1, %s676_s26 }
  0x30   : > { %p605_p7 = pneg %p604_p3 }
  0x32   : > { %p610_p0 = pnand %p609_p13, %p605_p7 }
  0x99   : > { %v247_v3 = vpop.permute.xlu0 %246  ;;  %v243_v4 = vpop.permute.xlu1 %242 }
  0x9a   : > { %v244_v6 = vsub.f32 %v243_v4, %v238_v0 }
  0x9c   : > { %v256_v8 = vmul.f32 %v244_v6, %v244_v6 }
  0x9e   : > { %v258_v14 = vmul.f32 %v257_v10, %v256_v8 }
  0xa1   : > { %v249_v7 = vpop.permute.xlu0 %248 }
  0xa2   : > { %v250_v9 = vsel %vm245_vm0, %v247_v3, %v249_v7 }
  0xa3   : > { %v251_v11 = vsub.f32 %v250_v9, %v238_v0 }
  0xa5   : > { %v253_v13 = vmul.f32 %v251_v11, %v251_v11 }
  0xa7   : > { %v255_v15 = vmul.f32 %v254_v12, %v253_v13 }
  0xa9   : > { %v259_v16 = vadd.f32 %v258_v14, %v255_v15 }
  0xab   : > { %266 = vadd.xlane.f32.xlu1 %v259_v16 }
 0x11e   : > { %v267_v17 = vpop.xlane.xlu1 %266 }
 0x11f   : > { %v268_v18 = vrot.slane %v267_v17, 4 }
 0x121   : > { %v269_v19 = vadd.f32 %v268_v18, %v267_v17 }
 0x123   : > { %v270_v20 = vrot.slane %v269_v19, 2 }
 0x125   : > { %v271_v21 = vadd.f32 %v270_v20, %v269_v19 }
 0x127   : > { %v272_v22 = vrot.slane %v271_v21, 1 }
 0x129   : > { %v273_v23 = vadd.f32 %v272_v22, %v271_v21 }
 0x12b   : > { %409 = vpush %v273_v23 }
 0x15c   : > { %s410_s28 = spop %409 }
 0x15d   : > { %v275_v24 = vstv %s410_s28 }
 0x15e   : > { %277 = vst [vmem:[%s231_s24] sm:$0xff] %v275_v24 }
 0x15f   : > { %613 = shalt.err (!%p610_p0)
}
 0x160   : > { %421 = dma.vmem_to_hbm [thread:$0]  (%p770_p2), %s292_s25, 128, %s294_s27, %s279_s29  }
 0x161 PF: > { %s305_s5 = sand.u32 1, %s652_s12   ;;  %p435_p4 = pnand %p397_p8, %p743_p5 }
 0x162   : > { %s306_s11 = scalar_lea.sflag [#allocation5], %s305_s5 }
 0x163   : > { %p436_p6 = pneg %p435_p4 }
 0x165   : > { %647 = dma.done.wait (%p436_p6), %s306_s11, 128  }
 0x166   : > { %649 = vsyncadd (%p436_p6), %s306_s11, 4294967168  ;;  %s20_s17 = sadd.s32 1, %s672_s17   ;;  %s853_s12 = smov %s656_s13 }
 0x167   : > { %p17_p9 = scmp.ge.s32.totalorder %s20_s17, 4   ;;  %s854_s13 = smov %s660_s14 }
 0x168   : > { %s855_s14 = smov %s780_s23  ;;  %s856_s15 = smov %s668_s16 }
 0x169   : > { %s857_s16 = smov %s859_s7  ;;  %19 = sbr.rel (!%p17_p9) target bundleno = 7 (0x7), region = 93 }
 0x16e   :  { %312 = vsyncpa [#allocation4], 1 }
 0x16f   :  { %314 = vsyncpa [#allocation4 + $0x1], 1 }
 0x170   :  { %315 = vsyncpa [#allocation7], 1 }
 0x171   :  { %316 = vsyncpa [#allocation5], 1 }
 0x172   :  { %318 = vsyncpa [#allocation5 + $0x1], 1 }

</bundles_post_ra>
